<compile_context>
chip_gen: v7x
topology: tpu7x:2x2x1
jax: 0.10.0
libtpu: 0.0.40
codegen_flags: <defaults>
</compile_context>

<pallas_src>
import functools
import math

import jax
import jax.numpy as jnp
from jax import lax
from jax.experimental import pallas as pl
from jax.experimental.pallas import tpu as pltpu


def _cdiv(a, b):
    return -(-a // b)


def _round_down_128(v):
    return max(128, (v // 128) * 128)


@functools.lru_cache(maxsize=None)
def _vmem_limit_bytes():
    """Scoped-VMEM request per generation: half of physical, capped at 64 MiB.

    v5e / v6e (128 MiB physical) -> 64 MiB;  v7x (64 MiB physical) -> 32 MiB.
    """
    try:
        cap = int(pltpu.get_tpu_info().vmem_capacity_bytes)
    except Exception:
        cap = 64 << 20  # conservative (v7x-sized) fallback
    return min(cap // 2, 64 << 20)


def _tile_budget_cols(F, itemsize):
    """Max number of (batch x lane) columns of an (..., F, lanes) block in budget.

    Accounts for 2x double-buffered input + 2x output blocks in x.dtype (Pallas
    pipeline) plus ~3 block-sized f32 temporaries live inside the kernel
    (x_f32, xc, y), so the same tiling also fits v7x's smaller VMEM.
    """
    budget = (_vmem_limit_bytes() * 5) // 8  # headroom for gamma/beta + scratch
    per_elem = 4 * itemsize + 3 * 4
    return max(1, budget // (per_elem * F))


def _select_tiles_3d(Bf, F, L, itemsize):
    cols = _tile_budget_cols(F, itemsize)            # budget for TB * TL
    tl_cap = _round_down_128(cols)
    # Whole spatial dim if it fits (full-dim blocks are always legal), otherwise a
    # multiple of 128 (lane-dense, boundary block masked via cdiv grid).
    TL = L if tl_cap >= L else tl_cap
    TB = max(1, min(Bf, cols // max(TL, 1)))
    # v7x has 2 TensorCores: make sure a "parallel" axis has >1 program if possible.
    if _cdiv(Bf, TB) * _cdiv(L, TL) == 1:
        if Bf >= 2:
            TB = _cdiv(Bf, 2)
        elif TL >= 256:
            TL = _round_down_128(_cdiv(TL, 2))
    return TB, TL


def _select_tile_2d(F, N, itemsize):
    cols = _tile_budget_cols(F, itemsize)
    if N <= 128:
        return N                                      # full (ragged) lane dim
    tn_cap = _round_down_128(cols)
    TN = N if tn_cap >= N else tn_cap
    if _cdiv(N, TN) == 1 and TN >= 256:               # give both v7x TCs work
        TN = _round_down_128(_cdiv(TN, 2))
    return TN


def _conv_layernorm_kernel(x_ref, g_ref, b_ref, o_ref, *, eps, bf16_apply):
    # Block layout: (..., F, lanes).  F sits on sublanes -> mean/var are cheap
    # sublane reductions; the lane axis stays dense for loads/stores.
    x = x_ref[...]
    xf = x.astype(jnp.float32)                        # statistics always in f32
    mean = jnp.mean(xf, axis=-2, keepdims=True)
    xc = xf - mean
    var = jnp.mean(xc * xc, axis=-2, keepdims=True)   # biased var (PyTorch LN)
    inv = lax.rsqrt(var + eps)                        # EUP
    g = g_ref[...]                                    # (F, 1): broadcasts over lanes
    b = b_ref[...]
    if bf16_apply:
        # Keep stats in f32 but apply scale/shift with bf16 VALUs so the bf16
        # path stays HBM-bound on v7x instead of becoming VALU-bound.
        o_ref[...] = ((x - mean.astype(x.dtype)) * inv.astype(x.dtype)
                      * g.astype(x.dtype) + b.astype(x.dtype))
    else:
        o_ref[...] = (xc * inv * g + b).astype(o_ref.dtype)


@functools.partial(jax.jit, static_argnames=("eps",))
def conv_layer_norm(x, gamma, beta, eps=1e-5):
    """Equivalent of ConvLayerNorm.forward: LayerNorm over axis -2 of x.

    x:     (..., num_features, L)   (e.g. (B, C, L) conv activations)
    gamma: (num_features,)
    beta:  (num_features,)
    """
    F = x.shape[-2]
    L = x.shape[-1]
    Bf = math.prod(x.shape[:-2]) if x.ndim > 2 else 1
    itemsize = jnp.dtype(x.dtype).itemsize
    bf16_apply = x.dtype == jnp.bfloat16
    kernel = functools.partial(_conv_layernorm_kernel, eps=eps, bf16_apply=bf16_apply)

    g2 = gamma.reshape(F, 1).astype(jnp.float32)
    b2 = beta.reshape(F, 1).astype(jnp.float32)
    vmem_limit = _vmem_limit_bytes()

    if L >= 128:
        # Main path: work directly in conv layout (Bf, F, L), no transposes.
        x3 = x.reshape(Bf, F, L)
        TB, TL = _select_tiles_3d(Bf, F, L, itemsize)
        out = pl.pallas_call(
            kernel,
            out_shape=jax.ShapeDtypeStruct((Bf, F, L), x.dtype),
            grid=(_cdiv(Bf, TB), _cdiv(L, TL)),       # cdiv: boundary blocks masked
            in_specs=[
                pl.BlockSpec((TB, F, TL), lambda i, j: (i, 0, j)),
                pl.BlockSpec((F, 1), lambda i, j: (0, 0)),
                pl.BlockSpec((F, 1), lambda i, j: (0, 0)),
            ],
            out_specs=pl.BlockSpec((TB, F, TL), lambda i, j: (i, 0, j)),
            compiler_params=pltpu.CompilerParams(
                dimension_semantics=("parallel", "parallel"),
                vmem_limit_bytes=vmem_limit),
        )(x3, g2, b2)
        return out.reshape(x.shape)

    # Small-spatial path (L < 128): a (Bf, F, L) block would use only L/128 of each
    # vreg/store.  One-time layout move to (F, Bf*L) outside the kernel so the lane
    # axis is dense; normalize over sublanes (axis -2), then move back.
    N = Bf * L
    xt = jnp.swapaxes(x.reshape(Bf, F, L), 0, 1).reshape(F, N)
    TN = _select_tile_2d(F, N, itemsize)
    out = pl.pallas_call(
        kernel,
        out_shape=jax.ShapeDtypeStruct((F, N), x.dtype),
        grid=(_cdiv(N, TN),),
        in_specs=[
            pl.BlockSpec((F, TN), lambda j: (0, j)),
            pl.BlockSpec((F, 1), lambda j: (0, 0)),
            pl.BlockSpec((F, 1), lambda j: (0, 0)),
        ],
        out_specs=pl.BlockSpec((F, TN), lambda j: (0, j)),
        compiler_params=pltpu.CompilerParams(
            dimension_semantics=("parallel",),
            vmem_limit_bytes=vmem_limit),
    )(xt, g2, b2)
    return jnp.swapaxes(out.reshape(F, Bf, L), 0, 1).reshape(x.shape)


if __name__ == "__main__":
    key = jax.random.PRNGKey(0)
    kx, kg, kb, kx2 = jax.random.split(key, 4)

    # Shapes consistent with the module: (batch, channels, spatial);
    # num_features = channels (the module normalizes over axis -2).
    B, C = 2, 4

    def reference(xf, gamma, beta, eps=1e-5):
        xt = jnp.swapaxes(xf, -1, -2)
        mean = xt.mean(-1, keepdims=True)
        var = ((xt - mean) ** 2).mean(-1, keepdims=True)
        y = (xt - mean) / jnp.sqrt(var + eps) * gamma + beta
        return jnp.swapaxes(y, -1, -2)

    gamma = 1.0 + 0.1 * jax.random.normal(kg, (C,), dtype=jnp.float32)
    beta = 0.1 * jax.random.normal(kb, (C,), dtype=jnp.float32)

    # 1) Small spatial dim (L=16): exercises the lane-dense (F, B*L) path.
    x_small = jax.random.normal(kx, (B, C, 16), dtype=jnp.float32)
    out_small = jax.block_until_ready(conv_layer_norm(x_small, gamma, beta))
    assert out_small.shape == x_small.shape
    assert jnp.allclose(out_small, reference(x_small, gamma, beta),
                        atol=1e-4, rtol=1e-4)

    # 2) Lane-dense spatial dim (L=256): exercises the main (B, C, L) path.
    x_big = jax.random.normal(kx2, (B, C, 256), dtype=jnp.float32)
    out_big = jax.block_until_ready(conv_layer_norm(x_big, gamma, beta))
    assert out_big.shape == x_big.shape
    assert jnp.allclose(out_big, reference(x_big, gamma, beta),
                        atol=1e-4, rtol=1e-4)

    # 3) bf16 input: exercises the bf16 scale/shift path (stats stay in f32).
    x_bf = x_big.astype(jnp.bfloat16)
    out_bf = jax.block_until_ready(conv_layer_norm(x_bf, gamma, beta))
    ref_bf = reference(x_bf.astype(jnp.float32), gamma, beta)
    assert out_bf.shape == x_bf.shape
    assert jnp.max(jnp.abs(out_bf.astype(jnp.float32) - ref_bf)) < 0.15

    print("KERNEL_OK")
</pallas_src>

<mosaic_0001>
module attributes {stable_mosaic.version = 11 : i64} {
  func.func @_conv_layernorm_kernel(%arg0: i32, %arg1: memref<4x32xf32, #tpu.memory_space<vmem>>, %arg2: memref<4x1xf32, #tpu.memory_space<vmem>>, %arg3: memref<4x1xf32, #tpu.memory_space<vmem>>, %arg4: memref<4x32xf32, #tpu.memory_space<vmem>>) attributes {dimension_semantics = [#tpu.dimension_semantics<parallel>], iteration_bounds = array<i64: 1>, scalar_prefetch = 0 : i64, scratch_operands = 0 : i64, tpu.core_type = #tpu.core_type<tc>, window_params = [{transform_indices = @transform_0, window_bounds = array<i64: 4, 32>}, {pipeline_mode = #tpu.pipeline_mode<synchronous>, transform_indices = @transform_1, window_bounds = array<i64: 4, 1>}, {pipeline_mode = #tpu.pipeline_mode<synchronous>, transform_indices = @transform_2, window_bounds = array<i64: 4, 1>}, {transform_indices = @transform_3, window_bounds = array<i64: 4, 32>}]} {
    %c0 = arith.constant 0 : index
    %c0_0 = arith.constant 0 : index
    %0 = vector.load %arg1[%c0, %c0_0] : memref<4x32xf32, #tpu.memory_space<vmem>>, vector<4x32xf32>
    %cst = arith.constant dense<0.000000e+00> : vector<32xf32>
    %1 = vector.multi_reduction <add>, %0, %cst [0] : vector<4x32xf32> to vector<32xf32>
    %2 = vector.shape_cast %1 : vector<32xf32> to vector<1x32xf32>
    %cst_1 = arith.constant 4.000000e+00 : f32
    %3 = vector.broadcast %cst_1 : f32 to vector<1x32xf32>
    %4 = arith.divf %2, %3 : vector<1x32xf32>
    %5 = vector.broadcast %4 : vector<1x32xf32> to vector<4x32xf32>
    %6 = arith.subf %0, %5 : vector<4x32xf32>
    %7 = arith.mulf %6, %6 : vector<4x32xf32>
    %cst_2 = arith.constant dense<0.000000e+00> : vector<32xf32>
    %8 = vector.multi_reduction <add>, %7, %cst_2 [0] : vector<4x32xf32> to vector<32xf32>
    %9 = vector.shape_cast %8 : vector<32xf32> to vector<1x32xf32>
    %cst_3 = arith.constant 4.000000e+00 : f32
    %10 = vector.broadcast %cst_3 : f32 to vector<1x32xf32>
    %11 = arith.divf %9, %10 : vector<1x32xf32>
    %cst_4 = arith.constant 9.99999974E-6 : f32
    %12 = vector.broadcast %cst_4 : f32 to vector<1x32xf32>
    %13 = arith.addf %11, %12 : vector<1x32xf32>
    %14 = math.rsqrt %13 : vector<1x32xf32>
    %c0_5 = arith.constant 0 : index
    %c0_6 = arith.constant 0 : index
    %15 = vector.load %arg2[%c0_5, %c0_6] : memref<4x1xf32, #tpu.memory_space<vmem>>, vector<4x1xf32>
    %c0_7 = arith.constant 0 : index
    %c0_8 = arith.constant 0 : index
    %16 = vector.load %arg3[%c0_7, %c0_8] : memref<4x1xf32, #tpu.memory_space<vmem>>, vector<4x1xf32>
    %17 = vector.broadcast %14 : vector<1x32xf32> to vector<4x32xf32>
    %18 = arith.mulf %6, %17 : vector<4x32xf32>
    %19 = vector.broadcast %15 : vector<4x1xf32> to vector<4x32xf32>
    %20 = arith.mulf %18, %19 : vector<4x32xf32>
    %21 = vector.broadcast %16 : vector<4x1xf32> to vector<4x32xf32>
    %22 = arith.addf %20, %21 : vector<4x32xf32>
    %c0_9 = arith.constant 0 : index
    %c0_10 = arith.constant 0 : index
    %23 = vector.load %arg4[%c0_9, %c0_10] : memref<4x32xf32, #tpu.memory_space<vmem>>, vector<4x32xf32>
    tpu.vector_store %arg4[%c0_9, %c0_10], %22 {strides = array<i32>} : memref<4x32xf32, #tpu.memory_space<vmem>>, vector<4x32xf32>,
    return
  }
  func.func @transform_0(%arg0: i32) -> (i32, i32) {
    %c0_i32 = arith.constant 0 : i32
    %c0_i32_0 = arith.constant 0 : i32
    return %c0_i32, %arg0 : i32, i32
  }
  func.func @transform_1(%arg0: i32) -> (i32, i32) {
    %c0_i32 = arith.constant 0 : i32
    %c0_i32_0 = arith.constant 0 : i32
    %c0_i32_1 = arith.constant 0 : i32
    return %c0_i32, %c0_i32_0 : i32, i32
  }
  func.func @transform_2(%arg0: i32) -> (i32, i32) {
    %c0_i32 = arith.constant 0 : i32
    %c0_i32_0 = arith.constant 0 : i32
    %c0_i32_1 = arith.constant 0 : i32
    return %c0_i32, %c0_i32_0 : i32, i32
  }
  func.func @transform_3(%arg0: i32) -> (i32, i32) {
    %c0_i32 = arith.constant 0 : i32
    %c0_i32_0 = arith.constant 0 : i32
    return %c0_i32, %arg0 : i32, i32
  }
}

</mosaic_0001>

<bundles_post_ra>
// kernel: conv_layer_norm.1
= control target key start
LH: loop header
LB: loop body
LE: loop exit
PB: predicated region body
PF: predicated region fallthrough
CT: control target
= control target key end

     0   :  { %v61_v0 = vmov 0   ;;  %vm15_vm0 = vcmask 257024   ;;  %s97_s1 = inlined_call_operand.vmem [shape: f32[4,1], index: 1, kind: input, shape index: {}]   ;;  %s98_s2 = inlined_call_operand.vmem [shape: f32[4,1], index: 2, kind: input, shape index: {}]   ;;  %s99_s0 = inlined_call_operand.vmem [shape: f32[4,32], index: 0, kind: input, shape index: {}]   ;;  %s100_s3 = inlined_call_operand.vmem [shape: f32[4,32], index: 3, kind: output, shape index: {}]  }
   0x1   :  { %58 = vset.pattern.permute.xlu0 %v61_v0  ;;  %v37_v1 = vld [vmem:[%s97_s1] sm:$0xf] }
   0x2   :  { %42 = vperm.xlu0 %58, %v37_v1   ;;  %v38_v2 = vld [vmem:[%s98_s2] sm:$0xf] }
   0x3   :  { %v14_v3 = vld [vmem:[%s99_s0] sm:$0xf] }
   0x4   :  { %v16_v4 = vsel %vm15_vm0, %v14_v3, 0.0 }
   0x5   :  { %v17_v5 = vrot.slane %v16_v4, 4 }
   0x6   :  { %48 = vperm.xlu0 %58, %v38_v2  }
   0x7   :  { %v18_v6 = vadd.f32 %v17_v5, %v16_v4 }
   0x9   :  { %v19_v7 = vrot.slane %v18_v6, 2 }
   0xb   :  { %v20_v8 = vadd.f32 %v19_v7, %v18_v6 }
   0xd   :  { %v21_v9 = vrot.slane %v20_v8, 1 }
   0xf   :  { %v22_v10 = vadd.f32 %v21_v9, %v20_v8 }
  0x11   :  { %v24_v11 = vmul.f32 0.25, %v22_v10 }
  0x13   :  { %v25_v12 = vsub.f32 %v14_v3, %v24_v11 }
  0x15   :  { %v26_v13 = vmul.f32 %v25_v12, %v25_v12 }
  0x17   :  { %v27_v14 = vsel %vm15_vm0, %v26_v13, 0.0 }
  0x18   :  { %v28_v15 = vrot.slane %v27_v14, 4 }
  0x1a   :  { %v29_v16 = vadd.f32 %v28_v15, %v27_v14 }
  0x1c   :  { %v30_v17 = vrot.slane %v29_v16, 2 }
  0x1e   :  { %v31_v18 = vadd.f32 %v30_v17, %v29_v16 }
  0x20   :  { %v32_v19 = vrot.slane %v31_v18, 1 }
  0x22   :  { %v33_v20 = vadd.f32 %v32_v19, %v31_v18 }
  0x24   :  { %v34_v21 = vmul.f32 0.25, %v33_v20 }
  0x26   :  { %v35_v22 = vadd.f32 1e-05, %v34_v21 }
  0x28   :  { %59 = vrsqrt.f32 %v35_v22 }
  0x32   :  { %v60_v23 = vpop.eup %59 }
  0x33   :  { %v39_v24 = vmul.f32 %v60_v23, %v25_v12 }
  0x81   :  { %v43_v25 = vpop.permute.xlu0 %42 }
  0x82   :  { %v45_v26 = vmul.f32 %v43_v25, %v39_v24 }
  0x85   :  { %v49_v27 = vpop.permute.xlu0 %48 }
  0x86   :  { %v51_v28 = vadd.f32 %v49_v27, %v45_v26 }
  0x88   :  { %52 = vst.msk [vmem:[%s100_s3] sm:$0xf] %vm15_vm0, %v51_v28 }

</bundles_post_ra>
